<compile_context>
chip_gen: v5e
topology: v5e:2x2
jax: 0.10.0
libtpu: 0.0.40
codegen_flags: <defaults>
</compile_context>

<pallas_src>
import math
import numpy as np

import jax
import jax.numpy as jnp
from jax.experimental import pallas as pl
from jax.experimental.pallas import tpu as pltpu


# Explicit scoped-VMEM limit: blocks below are <= ~4 MiB per buffer, so 32 MiB
# keeps double-buffering alive on v5e/v6e (128 MiB physical) and leaves
# headroom under v7x's 64 MiB physical VMEM per TensorCore.
_VMEM_LIMIT_BYTES = 32 * 1024 * 1024
_TARGET_BLOCK_BYTES = 1 << 20      # ~1 MiB blocks: ~85%+ of HBM roofline
_MAX_BLOCK_BYTES = 4 << 20         # hard per-block cap (double-buffer safety)
_MIN_GRID_STEPS = 8                # v7x megacore: >= ~4 steps per TensorCore


def _round_up(x: int, m: int) -> int:
    return ((x + m - 1) // m) * m


def _cdiv(a: int, b: int) -> int:
    return (a + b - 1) // b


def _lcm(a: int, b: int) -> int:
    return a * b // math.gcd(a, b)


# ----------------------------------------------------------------------------
# Kernel 1: channels-first mix   z[b] = W @ x[b]        (x: (B, C, N))
#   N sits on the lane axis -> lane-dense output, no wrapper-side transpose.
#   bb batches per block + big tile_n to reach ~1 MiB blocks.
# ----------------------------------------------------------------------------
def _make_cfirst_kernel(bb: int):
    def kernel(w_ref, x_ref, z_ref):
        w = w_ref[...]                              # (C, C), resident
        for b in range(bb):                         # static unroll over batch
            z_ref[b] = jnp.dot(
                w, x_ref[b], preferred_element_type=jnp.float32
            ).astype(z_ref.dtype)
    return kernel


def mix_channels_first(x3: jax.Array, w: jax.Array, *, compute_dtype=None,
                       max_tile_n: int = 8192) -> jax.Array:
    """x3: (B, C, N), w: (C, C)  ->  z with z[b] = w @ x3[b]."""
    B, C, N = x3.shape
    assert w.shape == (C, C)
    out_dtype = x3.dtype
    if compute_dtype is not None:
        x3 = x3.astype(compute_dtype)
        w = w.astype(compute_dtype)
    esz = x3.dtype.itemsize

    # --- N tile: big (toward 1-4 MiB blocks), lane dense (multiple of 128),
    #     but keep enough grid steps for v7x megacore sharding / pipelining.
    if N <= 512:
        tn = N                                      # full-dim block (always legal)
    else:
        cap = max(128, (_MAX_BLOCK_BYTES // (C * esz)) // 128 * 128)
        tn = min(max_tile_n, cap, _round_up(N, 128))
        tn = max(128, (tn // 128) * 128)
        while tn > 512 and B * _cdiv(N, tn) < _MIN_GRID_STEPS:
            tn = max(512, ((tn // 2) // 128) * 128)
    n_blocks = _cdiv(N, tn)        # partial last block: OOB columns are
                                   # column-local garbage and write-masked.

    # --- batch sub-block: grow block bytes toward ~1 MiB when C*tn is small.
    want = max(1, _TARGET_BLOCK_BYTES // max(1, C * tn * esz))
    bb = 1
    for d in range(min(B, want), 0, -1):
        if B % d == 0:
            bb = d
            break
    grid = (B // bb, n_blocks)

    return pl.pallas_call(
        _make_cfirst_kernel(bb),
        out_shape=jax.ShapeDtypeStruct((B, C, N), out_dtype),
        grid=grid,
        in_specs=[
            pl.BlockSpec((C, C), lambda b, j: (0, 0)),
            pl.BlockSpec((bb, C, tn), lambda b, j: (b, 0, j)),
        ],
        out_specs=pl.BlockSpec((bb, C, tn), lambda b, j: (b, 0, j)),
        compiler_params=pltpu.CompilerParams(
            dimension_semantics=("parallel", "parallel"),
            vmem_limit_bytes=_VMEM_LIMIT_BYTES,
        ),
        cost_estimate=pl.CostEstimate(
            flops=int(2 * B * C * C * N),
            transcendentals=0,
            bytes_accessed=int(esz * 2 * B * C * N + 4 * C * C),
        ),
    )(w, x3)


# ----------------------------------------------------------------------------
# Kernel 2: channels-last mix   z2d = x2d @ Wt           (x2d: (R, C))
#   G consecutive rows are packed into one lane row (width G*C, a multiple of
#   128 whenever possible) and multiplied by blockdiag(Wt) = kron(I_G, Wt):
#   free contiguous reshape, unmasked stores, resident weight.
# ----------------------------------------------------------------------------
def _mix_clast_kernel(x_ref, wt_ref, z_ref):
    z_ref[...] = jnp.dot(
        x_ref[...], wt_ref[...], preferred_element_type=jnp.float32
    ).astype(z_ref.dtype)


def mix_channels_last(x2d: jax.Array, wt: jax.Array, *, compute_dtype=None,
                      max_row_tile: int = 2048,
                      max_blockdiag_bytes: int = 4 << 20) -> jax.Array:
    """x2d: (R, C), wt: (C, C)  ->  (R, C) with z[r] = x[r] @ wt."""
    R, C = x2d.shape
    assert wt.shape == (C, C)
    out_dtype = x2d.dtype

    # Packing factor G: make the packed lane width G*C a multiple of 128.
    esz_w = (np.dtype(compute_dtype).itemsize if compute_dtype is not None
             else wt.dtype.itemsize)
    if C % 128 == 0:
        G = 1
    elif 128 % C == 0:
        G = 128 // C
    else:
        g = _lcm(C, 128) // C
        G = g if (g * C) * (g * C) * esz_w <= max_blockdiag_bytes else 1
    Cw = G * C

    R_pad = _round_up(R, G)
    if R_pad != R:
        # TODO(synk): this G-multiple row pad is one extra HBM pass; typical
        # callers (R = B*N) already satisfy it.
        x2d = jnp.pad(x2d, ((0, R_pad - R), (0, 0)))
    r_wide = R_pad // G
    xw = x2d.reshape(r_wide, Cw)                     # contiguous -> free view
    w_big = wt if G == 1 else jnp.kron(jnp.eye(G, dtype=wt.dtype), wt)
    if compute_dtype is not None:
        xw = xw.astype(compute_dtype)
        w_big = w_big.astype(compute_dtype)
    esz = xw.dtype.itemsize

    tm = max(8, min(max_row_tile, _TARGET_BLOCK_BYTES // max(1, Cw * esz)))
    tm = max(8, (tm // 8) * 8)
    if r_wide <= tm:
        tm = r_wide                                  # full-dim block (always legal)
    grid = (_cdiv(r_wide, tm),)

    zw = pl.pallas_call(
        _mix_clast_kernel,
        out_shape=jax.ShapeDtypeStruct((r_wide, Cw), out_dtype),
        grid=grid,
        in_specs=[
            pl.BlockSpec((tm, Cw), lambda i: (i, 0)),
            pl.BlockSpec((Cw, Cw), lambda i: (0, 0)),
        ],
        out_specs=pl.BlockSpec((tm, Cw), lambda i: (i, 0)),
        compiler_params=pltpu.CompilerParams(
            dimension_semantics=("parallel",),
            vmem_limit_bytes=_VMEM_LIMIT_BYTES,
        ),
        cost_estimate=pl.CostEstimate(
            flops=int(2 * r_wide * Cw * Cw),
            transcendentals=0,
            bytes_accessed=int(esz * (2 * r_wide * Cw + Cw * Cw)),
        ),
    )(xw, w_big)
    z2d = zw.reshape(R_pad, C)
    if R_pad != R:
        z2d = z2d[:R]
    return z2d


# ----------------------------------------------------------------------------
# Kernel 3: exact axis permutation (pure copies, no matmul).
#   The whole permutation group is loaded per grid step; the static index
#   permutation is applied in VMEM via unrolled slice copies.
# ----------------------------------------------------------------------------
def _make_lane_permute_kernel(idx_list, T: int):
    def kernel(x_ref, o_ref):
        # (tile_l, Pn*T) block: permute T-wide lane groups with static slices.
        for p, i in enumerate(idx_list):
            o_ref[:, p * T:(p + 1) * T] = x_ref[:, i * T:(i + 1) * T]
    return kernel


def _make_sublane_permute_kernel(idx_list):
    def kernel(x_ref, o_ref):
        # (1, Pn, tile_t) block: permute sublane groups with static slices.
        for p, i in enumerate(idx_list):
            o_ref[:, p:p + 1, :] = x_ref[:, i:i + 1, :]
    return kernel


def permute_axis(x: jax.Array, idx, axis: int, *, max_row_bytes: int = 512 << 10,
                 max_tile_l: int = 8192, max_tile_t: int = 8192) -> jax.Array:
    """out = x gathered along `axis` by the STATIC index array `idx` (exact)."""
    idx_list = [int(i) for i in np.asarray(idx)]
    ax = axis % x.ndim
    Pn = x.shape[ax]
    assert Pn == len(idx_list)
    L = int(np.prod(x.shape[:ax])) if ax > 0 else 1
    T = int(np.prod(x.shape[ax + 1:])) if ax + 1 < x.ndim else 1
    esz = x.dtype.itemsize
    W = Pn * T

    if W * esz <= max_row_bytes:
        # Fold (Pn, trailing) onto the lane axis: one big DMA in / out per
        # step, whole group permuted in VMEM.  Works for the last axis too
        # (T = 1).  Lane-dense writeback whenever Pn*T is a multiple of 128.
        x2 = x.reshape(L, W)
        tm = max(8, min(max_tile_l, _TARGET_BLOCK_BYTES // max(1, W * esz)))
        tm = max(8, (tm // 8) * 8)
        if L <= tm:
            tm = L
        grid = (_cdiv(L, tm),)
        out = pl.pallas_call(
            _make_lane_permute_kernel(idx_list, T),
            out_shape=jax.ShapeDtypeStruct((L, W), x.dtype),
            grid=grid,
            in_specs=[pl.BlockSpec((tm, W), lambda i: (i, 0))],
            out_specs=pl.BlockSpec((tm, W), lambda i: (i, 0)),
            compiler_params=pltpu.CompilerParams(
                dimension_semantics=("parallel",),
                vmem_limit_bytes=_VMEM_LIMIT_BYTES,
            ),
            cost_estimate=pl.CostEstimate(
                flops=0, transcendentals=0,
                bytes_accessed=int(2 * L * W * esz)),
        )(x2)
        return out.reshape(x.shape)

    # Very wide trailing block: keep the (L, Pn, T) view, tile the trailing
    # axis with lane-dense (multiple-of-128) tiles, permute sublane groups.
    x3 = x.reshape(L, Pn, T)
    tt = min(T, max_tile_t,
             max(128, (_MAX_BLOCK_BYTES // max(1, Pn * esz)) // 128 * 128))
    if tt < T:
        tt = max(128, (tt // 128) * 128)
    grid = (L, _cdiv(T, tt))
    out = pl.pallas_call(
        _make_sublane_permute_kernel(idx_list),
        out_shape=jax.ShapeDtypeStruct((L, Pn, T), x.dtype),
        grid=grid,
        in_specs=[pl.BlockSpec((1, Pn, tt), lambda l, j: (l, 0, j))],
        out_specs=pl.BlockSpec((1, Pn, tt), lambda l, j: (l, 0, j)),
        compiler_params=pltpu.CompilerParams(
            dimension_semantics=("parallel", "parallel"),
            vmem_limit_bytes=_VMEM_LIMIT_BYTES,
        ),
        cost_estimate=pl.CostEstimate(
            flops=0, transcendentals=0,
            bytes_accessed=int(2 * L * Pn * T * esz)),
    )(x3)
    return out.reshape(x.shape)


# ----------------------------------------------------------------------------
# Module-level wrappers (match the torch `Permutation` forward semantics)
# ----------------------------------------------------------------------------
class InvertibleConv1x1_1D:
    def __init__(self, channel: int, dim: int, key, compute_dtype=None):
        w_init = jax.random.normal(key, (channel, channel), dtype=jnp.float32)
        self.W = jnp.linalg.qr(w_init)[0].astype(jnp.float32)   # orthogonal init
        self.compute_dtype = compute_dtype
        if dim == 1:
            self.dim, self.Ndim = 1, 2          # 'ij,bjn->bin'
        elif dim == 2 or dim == -1:
            self.dim, self.Ndim = dim, 1        # 'ij,bnj->bni'
        else:
            raise NotImplementedError(f"Unsupported dim {dim} for InvertibleConv1x1.")

    def forward(self, x: jax.Array):
        if self.dim == 1:
            # (B, C, N): channels-first kernel, N on lanes, no transpose.
            z = mix_channels_first(x, self.W, compute_dtype=self.compute_dtype)
        else:
            # (B, N, C): channels-last kernel (lane-packed x2d @ W^T).
            B, N, C = x.shape
            z = mix_channels_last(x.reshape(B * N, C), self.W.T,
                                  compute_dtype=self.compute_dtype).reshape(B, N, C)
        # TODO(synk): slogdet/qr of the tiny CxC weight stay in plain JAX
        # (no clean Pallas equivalent; not the hot path).
        logdet = jnp.linalg.slogdet(self.W)[1] * x.shape[self.Ndim]
        return z, logdet


class _ShufflePermutation:
    def __init__(self, permutation: str, n_channel: int, dim: int, key):
        if permutation == "reverse":
            direct_idx = np.arange(n_channel - 1, -1, -1).astype(np.int32)
        elif permutation == "random":
            base = np.arange(n_channel - 1, -1, -1).astype(np.int32)
            perm = np.asarray(jax.random.permutation(key, n_channel))
            direct_idx = base[perm]
        else:
            raise ValueError(permutation)
        self.n_channel = n_channel
        self.dim = dim
        self.direct_idx_np = direct_idx
        self.direct_idx = jnp.asarray(direct_idx)

    def forward(self, x: jax.Array):
        ax = self.dim % x.ndim
        assert x.shape[ax] == self.n_channel
        return permute_axis(x, self.direct_idx_np, ax), None


class Permutation:
    def __init__(self, permutation: str, n_channel: int, dim: int, key,
                 compute_dtype=None):
        assert permutation in ["reverse", "random", "inv1x1"]
        assert dim in [-1, 1, 2, 3]
        if permutation == "inv1x1":
            self.permutater = InvertibleConv1x1_1D(n_channel, dim, key,
                                                   compute_dtype=compute_dtype)
        else:
            self.permutater = _ShufflePermutation(permutation, n_channel, dim, key)

    def forward(self, x: jax.Array, _c=None):
        return self.permutater.forward(x)


# ----------------------------------------------------------------------------
if __name__ == "__main__":
    key = jax.random.PRNGKey(0)
    k_w, k_x1, k_x2, k_x3, k_p = jax.random.split(key, 5)
    ok = True

    # --- case 1: inv1x1, dim=1, x: (B, C, N) = (2, 8, 16) --------------------
    B, C, N = 2, 8, 16
    x1 = jax.random.normal(k_x1, (B, C, N), dtype=jnp.float32)
    perm1 = Permutation("inv1x1", C, dim=1, key=k_w)
    z1, logdet1 = perm1.forward(x1, None)
    z1 = jax.block_until_ready(z1)
    W = perm1.permutater.W
    ok &= bool(jnp.allclose(z1, jnp.einsum("ij,bjn->bin", W, x1), atol=1e-5, rtol=1e-5))
    ok &= bool(jnp.allclose(logdet1, jnp.linalg.slogdet(W)[1] * N, atol=1e-5, rtol=1e-5))

    # --- case 2: inv1x1, dim=2, x: (B, N, C) = (2, 16, 8) --------------------
    x2 = jax.random.normal(k_x2, (B, N, C), dtype=jnp.float32)
    perm2 = Permutation("inv1x1", C, dim=2, key=k_w)
    z2, _ = perm2.forward(x2, None)
    z2 = jax.block_until_ready(z2)
    z2_ref = jnp.einsum("ij,bnj->bni", perm2.permutater.W, x2)
    ok &= bool(jnp.allclose(z2, z2_ref, atol=1e-5, rtol=1e-5))

    # --- case 3: reverse shuffle, dim=1 (group gather, W = Pn*T = 128) -------
    perm3 = Permutation("reverse", C, dim=1, key=k_p)
    z3, logdet3 = perm3.forward(x1, None)
    z3 = jax.block_until_ready(z3)
    ok &= bool(jnp.allclose(z3, x1[:, perm3.permutater.direct_idx], atol=0.0))
    ok &= logdet3 is None

    # --- case 4: random shuffle, dim=-1 (last axis, exact copy gather) -------
    perm4 = Permutation("random", C, dim=-1, key=k_p)
    z4, logdet4 = perm4.forward(x2, None)
    z4 = jax.block_until_ready(z4)
    ok &= bool(jnp.allclose(z4, x2[..., perm4.permutater.direct_idx], atol=0.0))
    ok &= logdet4 is None

    # --- case 5: random shuffle, dim=2 on a 4-D input (middle-axis gather) ---
    C5 = 6
    x5 = jax.random.normal(k_x3, (2, 4, C5, 16), dtype=jnp.float32)
    perm5 = Permutation("random", C5, dim=2, key=k_p)
    z5, logdet5 = perm5.forward(x5, None)
    z5 = jax.block_until_ready(z5)
    z5_ref = x5[:, :, perm5.permutater.direct_idx]
    ok &= bool(jnp.allclose(z5, z5_ref, atol=0.0))
    ok &= logdet5 is None

    # --- case 6: force the 3-D (sublane-permute) gather path -----------------
    z6 = permute_axis(x5, perm5.permutater.direct_idx_np, 2, max_row_bytes=0)
    z6 = jax.block_until_ready(z6)
    ok &= bool(jnp.allclose(z6, z5_ref, atol=0.0))

    # --- case 7: opt-in bf16 compute path for the inv1x1 mix ------------------
    perm7 = Permutation("inv1x1", C, dim=1, key=k_w, compute_dtype=jnp.bfloat16)
    z7, _ = perm7.forward(x1, None)
    z7 = jax.block_until_ready(z7)
    ok &= bool(jnp.allclose(z7, jnp.einsum("ij,bjn->bin", perm7.permutater.W, x1),
                            atol=1e-1, rtol=1e-1))

    if ok:
        print("KERNEL_OK")
    else:
        raise SystemExit("mismatch vs reference")
</pallas_src>

<mosaic_0001>
module attributes {stable_mosaic.version = 11 : i64} {
  func.func @kernel(%arg0: i32, %arg1: i32, %arg2: memref<8x8xf32, #tpu.memory_space<vmem>>, %arg3: memref<2x8x16xf32, #tpu.memory_space<vmem>>, %arg4: memref<2x8x16xf32, #tpu.memory_space<vmem>>) attributes {dimension_semantics = [#tpu.dimension_semantics<parallel>, #tpu.dimension_semantics<parallel>], iteration_bounds = array<i64: 1, 1>, scalar_prefetch = 0 : i64, scratch_operands = 0 : i64, tpu.core_type = #tpu.core_type<tc>, window_params = [{pipeline_mode = #tpu.pipeline_mode<synchronous>, transform_indices = @transform_0, window_bounds = array<i64: 8, 8>}, {transform_indices = @transform_1, window_bounds = array<i64: 2, 8, 16>}, {transform_indices = @transform_2, window_bounds = array<i64: 2, 8, 16>}]} {
    %c0 = arith.constant 0 : index
    %c0_0 = arith.constant 0 : index
    %0 = vector.load %arg2[%c0, %c0_0] : memref<8x8xf32, #tpu.memory_space<vmem>>, vector<8x8xf32>
    %c0_1 = arith.constant 0 : index
    %c0_2 = arith.constant 0 : index
    %c0_3 = arith.constant 0 : index
    %1 = vector.load %arg3[%c0_1, %c0_2, %c0_3] : memref<2x8x16xf32, #tpu.memory_space<vmem>>, vector<1x8x16xf32>
    %2 = vector.shape_cast %1 : vector<1x8x16xf32> to vector<8x16xf32>
    %cst = arith.constant dense<0.000000e+00> : vector<8x16xf32>
    %3 = tpu.matmul %0, %2, %cst {dimension_numbers = #tpu.dot_dimension_numbers<[1], [0], [0], [1], [0, 0, 1, 1], [], []>} : vector<8x8xf32>, vector<8x16xf32>, vector<8x16xf32> -> vector<8x16xf32>
    %c0_4 = arith.constant 0 : index
    %c0_5 = arith.constant 0 : index
    %c0_6 = arith.constant 0 : index
    %4 = vector.load %arg4[%c0_4, %c0_5, %c0_6] : memref<2x8x16xf32, #tpu.memory_space<vmem>>, vector<1x8x16xf32>
    %5 = vector.shape_cast %4 : vector<1x8x16xf32> to vector<8x16xf32>
    %6 = vector.shape_cast %3 : vector<8x16xf32> to vector<1x8x16xf32>
    tpu.vector_store %arg4[%c0_4, %c0_5, %c0_6], %6 {strides = array<i32>} : memref<2x8x16xf32, #tpu.memory_space<vmem>>, vector<1x8x16xf32>,
    %c1 = arith.constant 1 : index
    %c0_7 = arith.constant 0 : index
    %c0_8 = arith.constant 0 : index
    %7 = vector.load %arg3[%c1, %c0_7, %c0_8] : memref<2x8x16xf32, #tpu.memory_space<vmem>>, vector<1x8x16xf32>
    %8 = vector.shape_cast %7 : vector<1x8x16xf32> to vector<8x16xf32>
    %cst_9 = arith.constant dense<0.000000e+00> : vector<8x16xf32>
    %9 = tpu.matmul %0, %8, %cst_9 {dimension_numbers = #tpu.dot_dimension_numbers<[1], [0], [0], [1], [0, 0, 1, 1], [], []>} : vector<8x8xf32>, vector<8x16xf32>, vector<8x16xf32> -> vector<8x16xf32>
    %c1_10 = arith.constant 1 : index
    %c0_11 = arith.constant 0 : index
    %c0_12 = arith.constant 0 : index
    %10 = vector.load %arg4[%c1_10, %c0_11, %c0_12] : memref<2x8x16xf32, #tpu.memory_space<vmem>>, vector<1x8x16xf32>
    %11 = vector.shape_cast %10 : vector<1x8x16xf32> to vector<8x16xf32>
    %12 = vector.shape_cast %9 : vector<8x16xf32> to vector<1x8x16xf32>
    tpu.vector_store %arg4[%c1_10, %c0_11, %c0_12], %12 {strides = array<i32>} : memref<2x8x16xf32, #tpu.memory_space<vmem>>, vector<1x8x16xf32>,
    return
  }
  func.func @transform_0(%arg0: i32, %arg1: i32) -> (i32, i32) {
    %c0_i32 = arith.constant 0 : i32
    %c0_i32_0 = arith.constant 0 : i32
    %c0_i32_1 = arith.constant 0 : i32
    return %c0_i32, %c0_i32_0 : i32, i32
  }
  func.func @transform_1(%arg0: i32, %arg1: i32) -> (i32, i32, i32) {
    %c0_i32 = arith.constant 0 : i32
    %c0_i32_0 = arith.constant 0 : i32
    return %arg0, %c0_i32, %arg1 : i32, i32, i32
  }
  func.func @transform_2(%arg0: i32, %arg1: i32) -> (i32, i32, i32) {
    %c0_i32 = arith.constant 0 : i32
    %c0_i32_0 = arith.constant 0 : i32
    return %arg0, %c0_i32, %arg1 : i32, i32, i32
  }
}

</mosaic_0001>

<bundles_post_ra>
// kernel: tpu_custom_call.1
= control target key start
LH: loop header
LB: loop body
LE: loop exit
PB: predicated region body
PF: predicated region fallthrough
CT: control target
= control target key end

     0   :  { %7 = vsyncpa [#allocation3], 0  ;;  %s228_s0 = inlined_call_operand.hbm [shape: f32[8,8], index: 0, kind: input, shape index: {}]   ;;  %s229_s1 = inlined_call_operand.hbm [shape: f32[2,8,16], index: 1, kind: input, shape index: {}]   ;;  %s230_s2 = inlined_call_operand.hbm [shape: f32[2,8,16], index: 2, kind: output, shape index: {}]  }
   0x1   :  { %8 = vsyncpa [#allocation6], 0 }
   0x2   :  { %9 = vsyncpa [#allocation4], 0  ;;  %s15_s11 = sshll.u32 %s228_s0, 4  ;;  %s199_s12 = smov [#allocation2]   ;;  %s16_s11 = int_to_ptr.hbm [resolvable:$true] %s15_s11 }
   0x3   :  { %s17_s13 = sshll.u32 %s199_s12, 4  ;;  %s25_s16 = sshll.u32 %s229_s1, 4  ;;  %s18_s13 = int_to_ptr.vmem [resolvable:$true] %s17_s13  ;;  %s26_s16 = int_to_ptr.hbm [resolvable:$true] %s25_s16 }
   0x4   :  { %20 = dma.hbm_to_vmem [thread:$0]  %s16_s11, 128, %s18_s13, [#allocation3]  }
   0x5   :  { %s200_s17 = smov [#allocation5]   ;;  %s201_s19 = smov 128  }
   0x6   :  { %s27_s18 = sshll.u32 %s200_s17, 4  ;;  %s202_s20 = smov 8   ;;  %s28_s18 = int_to_ptr.vmem [resolvable:$true] %s27_s18 }
   0x7   :  { %33 = dma.hbm_to_vmem [thread:$0]  %s26_s16, 256, %s28_s18, [#allocation6], %s201_s19, %s201_s19, %s202_s20  }
   0x8   :  { %193 = dma.done.wait [#allocation3], 128  }
   0x9   :  { %194 = vsyncadd [#allocation3], 4294967168 }
   0xa   :  { %195 = dma.done.wait [#allocation6], 256  }
   0xb   :  { %196 = vsyncadd [#allocation6], 4294967040  ;;  %vm44_vm0 = vcmask 64512   ;;  %v43_v0 = vld [vmem:[#allocation5] sm:$0xff]  ;;  %v71_v1 = vld [vmem:[#allocation5 + $0x8] sm:$0xff]  ;;  %s203_s0 = smov [#allocation7]  }
   0xc   :  { %v42_v2 = vld [vmem:[#allocation2] sm:$0xff]  ;;  %63 = vmatpush.msra.mxu0 %v43_v0  ;;  %87 = vmatpush.msra.mxu1 %v71_v1  ;;  %s98_s1 = sshll.u32 %s203_s0, 4  ;;  %s100_s23 = sshll.u32 %s230_s2, 4  ;;  %vm68_vm1 = vcmask 130048   ;;  %s99_s1 = int_to_ptr.vmem [resolvable:$true] %s98_s1  ;;  %s101_s23 = int_to_ptr.hbm [resolvable:$true] %s100_s23 }
   0xd   :  { %114 = vmatmul.msk.f32.vlgmr.msra.gmra.mxu0 %vm44_vm0, %v42_v2  ;;  %115 = vmatmul.msk.f32.vlgmr.msra.gmra.mxu1 %vm44_vm0, %v42_v2 }
  0x8a   :  { %v65_v3 = vpop.f32.mrf.mxu0  ;;  %v89_v4 = vpop.f32.mrf.mxu1 }
  0x8b   :  { %69 = vst.msk [vmem:[#allocation7] sm:$0xff] %vm68_vm1, %v65_v3 }
  0x8c   :  { %93 = vst.msk [vmem:[#allocation7 + $0x8] sm:$0xff] %vm68_vm1, %v89_v4 }
  0x8d   :  { %106 = dma.vmem_to_hbm [thread:$0]  %s99_s1, 256, %s101_s23, [#allocation4], %s201_s19, %s201_s19, %s202_s20  }
  0x8e   :  { %197 = dma.done.wait [#allocation4], 256  }
  0x8f   :  { %198 = vsyncadd [#allocation4], 4294967040 }
  0x90   :  { %111 = vsyncpa [#allocation3], 1 }
  0x91   :  { %112 = vsyncpa [#allocation6], 1 }
  0x92   :  { %113 = vsyncpa [#allocation4], 1 }

</bundles_post_ra>
